<compile_context>
chip_gen: v5e
topology: v5e:2x2
jax: 0.10.0
libtpu: 0.0.40
codegen_flags: <defaults>
</compile_context>

<pallas_src>
import math

import jax
import jax.numpy as jnp
from jax.experimental import pallas as pl
from jax.experimental.pallas import tpu as pltpu

_LN_EPS = 1e-5
_LANE = 128
_MAX_TB = 8192           # upper cap on the batch tile (rows)
_MIN_ROWS_PER_TILE = 1024  # only force a >=4-tile grid when tiles stay this big


def _gelu(x):
    # TODO(synk): PyTorch nn.GELU defaults to the exact erf form; the tanh
    # approximation is used for guaranteed Mosaic lowering (max abs err ~1e-3).
    c = 0.7978845608028654  # sqrt(2/pi)
    return 0.5 * x * (1.0 + jnp.tanh(c * (x + 0.044715 * x * x * x)))


def _sigmoid_in_kernel(x):
    # exp goes to the EUP; approx reciprocal also rides the EUP slot (VALU-free).
    return pl.reciprocal(1.0 + jnp.exp(-x), approx=True)


def _make_event_mlp_kernel(num_layers, output_dim, out_pad):
    def kernel(*refs):
        # refs = (x, w0, b0, w1, b1, ..., w_{L-1}, b_{L-1}, gamma, beta, out)
        x_ref = refs[0]
        gamma_ref = refs[1 + 2 * num_layers]
        beta_ref = refs[2 + 2 * num_layers]
        o_ref = refs[-1]

        h = x_ref[...]
        for i in range(num_layers):
            w_ref = refs[1 + 2 * i]
            b_ref = refs[2 + 2 * i]
            if i == num_layers - 1:
                # LayerNorm(hidden_dim) applied only before the final projection
                # (f32 math regardless of activation dtype).
                hf = h.astype(jnp.float32)
                mu = jnp.mean(hf, axis=-1, keepdims=True)
                var = jnp.mean(jnp.square(hf - mu), axis=-1, keepdims=True)
                hf = (hf - mu) * jax.lax.rsqrt(var + _LN_EPS)
                h = hf * gamma_ref[...] + beta_ref[...]
            w = w_ref[...]
            # Cast activation to the weight dtype (bf16 MXU fast path when weights
            # are bf16); accumulate in f32.
            h = jnp.dot(h.astype(w.dtype), w, preferred_element_type=jnp.float32)
            h = h + b_ref[...].astype(jnp.float32)
            if i < num_layers - 1:
                h = _gelu(h)
        if out_pad != output_dim:
            # Padded matmul lanes are dropped before the store so the HBM
            # writeback is only output_dim wide.
            h = h[:, :output_dim]
        o_ref[...] = _sigmoid_in_kernel(h).astype(o_ref.dtype)

    return kernel


def _round_up(n, m):
    return ((n + m - 1) // m) * m


def _sublane_multiple(itemsize):
    # f32 -> 8, bf16/f16 -> 16, int8/fp8 -> 32 (sublane packing).
    return max(8, 32 // max(int(itemsize), 1))


def _vmem_budget_bytes():
    """~3/4 of physical VMEM: ~96 MiB on v5e/v6e (128 MiB), ~48 MiB on v7x (64 MiB)."""
    cap = 64 * 1024 * 1024
    try:
        info = pltpu.get_tpu_info()
        cap = int(getattr(info, "vmem_capacity_bytes", cap))
    except Exception:
        pass
    return max((cap * 3) // 4, 16 * 1024 * 1024)


def _pick_batch_tile(B, input_dim, hidden_dim, out_pad, output_dim,
                     param_bytes, x_itemsize, out_itemsize, vmem_budget):
    """Largest batch tile keeping streamed buffers + resident params in VMEM.

    Returns None if the (double-buffered) resident params alone exceed the budget.
    """
    # BlockSpec inputs are double-buffered by default, even with constant block
    # indices -> charge 2x the parameter bytes, plus headroom.
    budget = vmem_budget - 2 * param_bytes - (2 << 20)
    if budget < (1 << 20):
        return None

    widest = max(input_dim, hidden_dim, out_pad)
    # double-buffered x / out blocks + f32 intermediates (2x slack for temps)
    per_row = (2 * input_dim * x_itemsize
               + 2 * output_dim * out_itemsize
               + 2 * 4 * widest)
    tb = budget // max(per_row, 1)

    sub = _sublane_multiple(x_itemsize)
    tb = (tb // sub) * sub
    tb = max(sub, min(_MAX_TB, tb))

    # Keep at least ~4 tiles (>=2 per v7x TensorCore) when the batch is large
    # enough that the tiles stay big.
    if B >= 4 * _MIN_ROWS_PER_TILE:
        tb = min(tb, _round_up(-(-B // 4), sub))

    return B if B <= tb else tb


def event_mlp_pallas(x, weights, biases, gamma, beta):
    """Event_MLP forward with a fused Pallas kernel.

    x:       [..., input_dim]
    weights: list of [in_d, out_d]  (transposed from torch's [out_d, in_d])
    biases:  list of [out_d]
    gamma/beta: [hidden_dim] LayerNorm affine params
    """
    num_layers = len(weights)
    assert num_layers >= 2, "Event_MLP requires num_layers >= 2 (LayerNorm(h[-1]))"
    *lead, input_dim = x.shape
    hidden_dim = weights[-1].shape[0]
    output_dim = weights[-1].shape[1]

    x2 = x.reshape(-1, input_dim)
    B = x2.shape[0]

    # Pad only the final weight/bias to a multiple of 128 lanes so the last matmul
    # stays lane-dense on the MXU; the HBM output itself is NOT padded (the kernel
    # slices back to output_dim before storing).
    out_pad = _round_up(output_dim, _LANE)
    w_last, b_last = weights[-1], biases[-1]
    if out_pad != output_dim:
        w_last = jnp.pad(w_last, ((0, 0), (0, out_pad - output_dim)))
        b_last = jnp.pad(b_last, (0, out_pad - output_dim))

    ws = list(weights[:-1]) + [w_last]
    bs = [b.reshape(1, -1) for b in (list(biases[:-1]) + [b_last])]
    gamma2 = gamma.reshape(1, hidden_dim).astype(jnp.float32)
    beta2 = beta.reshape(1, hidden_dim).astype(jnp.float32)

    param_arrays = ws + bs + [gamma2, beta2]
    param_bytes = sum(int(a.size) * a.dtype.itemsize for a in param_arrays)

    vmem_budget = _vmem_budget_bytes()
    TB = _pick_batch_tile(B, input_dim, hidden_dim, out_pad, output_dim,
                          param_bytes, x2.dtype.itemsize, x.dtype.itemsize,
                          vmem_budget)
    if TB is None:
        # TODO(synk): implement a K-split (extra trailing "arbitrary" grid axis over
        # hidden_dim with an f32 VMEM accumulator) instead of falling back to XLA.
        return event_mlp_reference(x, weights, biases, gamma, beta)

    grid = (pl.cdiv(B, TB),)

    # x / out stream over the batch grid axis; weights, biases and LN params use a
    # constant block index -> fetched once, VMEM-resident across all batch tiles.
    in_specs = [pl.BlockSpec((TB, input_dim), lambda i: (i, 0))]
    for w, b in zip(ws, bs):
        in_specs.append(pl.BlockSpec(w.shape, lambda i: (0, 0)))
        in_specs.append(pl.BlockSpec(b.shape, lambda i: (0, 0)))
    in_specs.append(pl.BlockSpec(gamma2.shape, lambda i: (0, 0)))
    in_specs.append(pl.BlockSpec(beta2.shape, lambda i: (0, 0)))

    flat_params = [a for pair in zip(ws, bs) for a in pair]

    out = pl.pallas_call(
        _make_event_mlp_kernel(num_layers, output_dim, out_pad),
        out_shape=jax.ShapeDtypeStruct((B, output_dim), x.dtype),
        grid_spec=pltpu.PrefetchScalarGridSpec(
            num_scalar_prefetch=0,
            grid=grid,
            in_specs=in_specs,
            out_specs=pl.BlockSpec((TB, output_dim), lambda i: (i, 0)),
        ),
        compiler_params=pltpu.CompilerParams(
            dimension_semantics=("parallel",),
            vmem_limit_bytes=int(vmem_budget),
        ),
    )(x2, *flat_params, gamma2, beta2)

    return out.reshape(*lead, output_dim)


def event_mlp_reference(x, weights, biases, gamma, beta):
    """Pure-JAX reference matching the PyTorch Event_MLP forward."""
    num_layers = len(weights)
    h = x.astype(jnp.float32)
    for i, (w, b) in enumerate(zip(weights, biases)):
        if i == num_layers - 1:
            mu = jnp.mean(h, axis=-1, keepdims=True)
            var = jnp.mean(jnp.square(h - mu), axis=-1, keepdims=True)
            h = (h - mu) * jax.lax.rsqrt(var + _LN_EPS)
            h = h * gamma.astype(jnp.float32) + beta.astype(jnp.float32)
        h = h @ w.astype(jnp.float32) + b.astype(jnp.float32)
        if i < num_layers - 1:
            h = _gelu(h)
    return (1.0 / (1.0 + jnp.exp(-h))).astype(x.dtype)


def event_mlp(x, weights, biases, gamma, beta, *, force_pallas=False):
    """Dispatcher: skip the Pallas launch when the problem is tiny (pure overhead)."""
    rows = math.prod(x.shape[:-1]) if x.ndim > 1 else 1
    if not force_pallas and rows * x.shape[-1] < (1 << 16):
        return event_mlp_reference(x, weights, biases, gamma, beta)
    return event_mlp_pallas(x, weights, biases, gamma, beta)


if __name__ == "__main__":
    key = jax.random.PRNGKey(0)

    batch, seq = 2, 8
    input_dim, hidden_dim, output_dim, num_layers = 32, 32, 4, 3

    keys = jax.random.split(key, 2 * num_layers + 3)
    dims = [input_dim] + [hidden_dim] * (num_layers - 1) + [output_dim]
    weights, biases = [], []
    for i in range(num_layers):
        scale = 1.0 / (dims[i] ** 0.5)
        weights.append(
            scale * jax.random.normal(keys[2 * i], (dims[i], dims[i + 1]), jnp.float32))
        biases.append(
            0.02 * jax.random.normal(keys[2 * i + 1], (dims[i + 1],), jnp.float32))
    gamma = 1.0 + 0.1 * jax.random.normal(keys[-3], (hidden_dim,), jnp.float32)
    beta = 0.1 * jax.random.normal(keys[-2], (hidden_dim,), jnp.float32)

    x = jax.random.normal(keys[-1], (batch, seq, input_dim), jnp.float32)

    y = event_mlp_pallas(x, weights, biases, gamma, beta)
    y = jax.block_until_ready(y)

    y_ref = event_mlp_reference(x, weights, biases, gamma, beta)
    assert y.shape == (batch, seq, output_dim)
    max_diff = float(jnp.max(jnp.abs(y - y_ref)))
    assert jnp.allclose(y, y_ref, atol=5e-3, rtol=0.0), f"mismatch vs ref: {max_diff}"

    print("KERNEL_OK")
</pallas_src>

<mosaic_0001>
module attributes {stable_mosaic.version = 11 : i64} {
  func.func @kernel(%arg0: i32, %arg1: memref<16x32xf32, #tpu.memory_space<vmem>>, %arg2: memref<32x32xf32, #tpu.memory_space<vmem>>, %arg3: memref<1x32xf32, #tpu.memory_space<vmem>>, %arg4: memref<32x32xf32, #tpu.memory_space<vmem>>, %arg5: memref<1x32xf32, #tpu.memory_space<vmem>>, %arg6: memref<32x128xf32, #tpu.memory_space<vmem>>, %arg7: memref<1x128xf32, #tpu.memory_space<vmem>>, %arg8: memref<1x32xf32, #tpu.memory_space<vmem>>, %arg9: memref<1x32xf32, #tpu.memory_space<vmem>>, %arg10: memref<16x4xf32, #tpu.memory_space<vmem>>) attributes {dimension_semantics = [#tpu.dimension_semantics<parallel>], iteration_bounds = array<i64: 1>, scalar_prefetch = 0 : i64, scratch_operands = 0 : i64, tpu.core_type = #tpu.core_type<tc>, window_params = [{transform_indices = @transform_0, window_bounds = array<i64: 16, 32>}, {pipeline_mode = #tpu.pipeline_mode<synchronous>, transform_indices = @transform_1, window_bounds = array<i64: 32, 32>}, {pipeline_mode = #tpu.pipeline_mode<synchronous>, transform_indices = @transform_2, window_bounds = array<i64: 1, 32>}, {pipeline_mode = #tpu.pipeline_mode<synchronous>, transform_indices = @transform_3, window_bounds = array<i64: 32, 32>}, {pipeline_mode = #tpu.pipeline_mode<synchronous>, transform_indices = @transform_4, window_bounds = array<i64: 1, 32>}, {pipeline_mode = #tpu.pipeline_mode<synchronous>, transform_indices = @transform_5, window_bounds = array<i64: 32, 128>}, {pipeline_mode = #tpu.pipeline_mode<synchronous>, transform_indices = @transform_6, window_bounds = array<i64: 1, 128>}, {pipeline_mode = #tpu.pipeline_mode<synchronous>, transform_indices = @transform_7, window_bounds = array<i64: 1, 32>}, {pipeline_mode = #tpu.pipeline_mode<synchronous>, transform_indices = @transform_8, window_bounds = array<i64: 1, 32>}, {transform_indices = @transform_9, window_bounds = array<i64: 16, 4>}]} {
    %c0 = arith.constant 0 : index
    %c0_0 = arith.constant 0 : index
    %0 = vector.load %arg1[%c0, %c0_0] : memref<16x32xf32, #tpu.memory_space<vmem>>, vector<16x32xf32>
    %c0_1 = arith.constant 0 : index
    %c0_2 = arith.constant 0 : index
    %1 = vector.load %arg2[%c0_1, %c0_2] : memref<32x32xf32, #tpu.memory_space<vmem>>, vector<32x32xf32>
    %cst = arith.constant dense<0.000000e+00> : vector<16x32xf32>
    %2 = tpu.matmul %0, %1, %cst {dimension_numbers = #tpu.dot_dimension_numbers<[1], [0], [0], [1], [0, 0, 1, 1], [], []>} : vector<16x32xf32>, vector<32x32xf32>, vector<16x32xf32> -> vector<16x32xf32>
    %c0_3 = arith.constant 0 : index
    %c0_4 = arith.constant 0 : index
    %3 = vector.load %arg3[%c0_3, %c0_4] : memref<1x32xf32, #tpu.memory_space<vmem>>, vector<1x32xf32>
    %4 = vector.broadcast %3 : vector<1x32xf32> to vector<16x32xf32>
    %5 = arith.addf %2, %4 : vector<16x32xf32>
    %cst_5 = arith.constant 5.000000e-01 : f32
    %6 = vector.broadcast %cst_5 : f32 to vector<16x32xf32>
    %7 = arith.mulf %6, %5 : vector<16x32xf32>
    %cst_6 = arith.constant 4.471500e-02 : f32
    %8 = vector.broadcast %cst_6 : f32 to vector<16x32xf32>
    %9 = arith.mulf %8, %5 : vector<16x32xf32>
    %10 = arith.mulf %9, %5 : vector<16x32xf32>
    %11 = arith.mulf %10, %5 : vector<16x32xf32>
    %12 = arith.addf %5, %11 : vector<16x32xf32>
    %cst_7 = arith.constant 0.797884583 : f32
    %13 = vector.broadcast %cst_7 : f32 to vector<16x32xf32>
    %14 = arith.mulf %13, %12 : vector<16x32xf32>
    %15 = math.tanh %14 : vector<16x32xf32>
    %cst_8 = arith.constant 1.000000e+00 : f32
    %16 = vector.broadcast %cst_8 : f32 to vector<16x32xf32>
    %17 = arith.addf %16, %15 : vector<16x32xf32>
    %18 = arith.mulf %7, %17 : vector<16x32xf32>
    %c0_9 = arith.constant 0 : index
    %c0_10 = arith.constant 0 : index
    %19 = vector.load %arg4[%c0_9, %c0_10] : memref<32x32xf32, #tpu.memory_space<vmem>>, vector<32x32xf32>
    %cst_11 = arith.constant dense<0.000000e+00> : vector<16x32xf32>
    %20 = tpu.matmul %18, %19, %cst_11 {dimension_numbers = #tpu.dot_dimension_numbers<[1], [0], [0], [1], [0, 0, 1, 1], [], []>} : vector<16x32xf32>, vector<32x32xf32>, vector<16x32xf32> -> vector<16x32xf32>
    %c0_12 = arith.constant 0 : index
    %c0_13 = arith.constant 0 : index
    %21 = vector.load %arg5[%c0_12, %c0_13] : memref<1x32xf32, #tpu.memory_space<vmem>>, vector<1x32xf32>
    %22 = vector.broadcast %21 : vector<1x32xf32> to vector<16x32xf32>
    %23 = arith.addf %20, %22 : vector<16x32xf32>
    %cst_14 = arith.constant 5.000000e-01 : f32
    %24 = vector.broadcast %cst_14 : f32 to vector<16x32xf32>
    %25 = arith.mulf %24, %23 : vector<16x32xf32>
    %cst_15 = arith.constant 4.471500e-02 : f32
    %26 = vector.broadcast %cst_15 : f32 to vector<16x32xf32>
    %27 = arith.mulf %26, %23 : vector<16x32xf32>
    %28 = arith.mulf %27, %23 : vector<16x32xf32>
    %29 = arith.mulf %28, %23 : vector<16x32xf32>
    %30 = arith.addf %23, %29 : vector<16x32xf32>
    %cst_16 = arith.constant 0.797884583 : f32
    %31 = vector.broadcast %cst_16 : f32 to vector<16x32xf32>
    %32 = arith.mulf %31, %30 : vector<16x32xf32>
    %33 = math.tanh %32 : vector<16x32xf32>
    %cst_17 = arith.constant 1.000000e+00 : f32
    %34 = vector.broadcast %cst_17 : f32 to vector<16x32xf32>
    %35 = arith.addf %34, %33 : vector<16x32xf32>
    %36 = arith.mulf %25, %35 : vector<16x32xf32>
    %cst_18 = arith.constant dense<0.000000e+00> : vector<16xf32>
    %37 = vector.multi_reduction <add>, %36, %cst_18 [1] : vector<16x32xf32> to vector<16xf32>
    %38 = vector.shape_cast %37 : vector<16xf32> to vector<16x1xf32>
    %cst_19 = arith.constant 3.200000e+01 : f32
    %39 = vector.broadcast %cst_19 : f32 to vector<16x1xf32>
    %40 = arith.divf %38, %39 : vector<16x1xf32>
    %41 = vector.broadcast %40 : vector<16x1xf32> to vector<16x32xf32>
    %42 = arith.subf %36, %41 : vector<16x32xf32>
    %43 = arith.mulf %42, %42 : vector<16x32xf32>
    %cst_20 = arith.constant dense<0.000000e+00> : vector<16xf32>
    %44 = vector.multi_reduction <add>, %43, %cst_20 [1] : vector<16x32xf32> to vector<16xf32>
    %45 = vector.shape_cast %44 : vector<16xf32> to vector<16x1xf32>
    %cst_21 = arith.constant 3.200000e+01 : f32
    %46 = vector.broadcast %cst_21 : f32 to vector<16x1xf32>
    %47 = arith.divf %45, %46 : vector<16x1xf32>
    %48 = vector.broadcast %40 : vector<16x1xf32> to vector<16x32xf32>
    %49 = arith.subf %36, %48 : vector<16x32xf32>
    %cst_22 = arith.constant 9.99999974E-6 : f32
    %50 = vector.broadcast %cst_22 : f32 to vector<16x1xf32>
    %51 = arith.addf %47, %50 : vector<16x1xf32>
    %52 = math.rsqrt %51 : vector<16x1xf32>
    %53 = vector.broadcast %52 : vector<16x1xf32> to vector<16x32xf32>
    %54 = arith.mulf %49, %53 : vector<16x32xf32>
    %c0_23 = arith.constant 0 : index
    %c0_24 = arith.constant 0 : index
    %55 = vector.load %arg8[%c0_23, %c0_24] : memref<1x32xf32, #tpu.memory_space<vmem>>, vector<1x32xf32>
    %56 = vector.broadcast %55 : vector<1x32xf32> to vector<16x32xf32>
    %57 = arith.mulf %54, %56 : vector<16x32xf32>
    %c0_25 = arith.constant 0 : index
    %c0_26 = arith.constant 0 : index
    %58 = vector.load %arg9[%c0_25, %c0_26] : memref<1x32xf32, #tpu.memory_space<vmem>>, vector<1x32xf32>
    %59 = vector.broadcast %58 : vector<1x32xf32> to vector<16x32xf32>
    %60 = arith.addf %57, %59 : vector<16x32xf32>
    %c0_27 = arith.constant 0 : index
    %c0_28 = arith.constant 0 : index
    %61 = vector.load %arg6[%c0_27, %c0_28] : memref<32x128xf32, #tpu.memory_space<vmem>>, vector<32x128xf32>
    %cst_29 = arith.constant dense<0.000000e+00> : vector<16x128xf32>
    %62 = tpu.matmul %60, %61, %cst_29 {dimension_numbers = #tpu.dot_dimension_numbers<[1], [0], [0], [1], [0, 0, 1, 1], [], []>} : vector<16x32xf32>, vector<32x128xf32>, vector<16x128xf32> -> vector<16x128xf32>
    %c0_30 = arith.constant 0 : index
    %c0_31 = arith.constant 0 : index
    %63 = vector.load %arg7[%c0_30, %c0_31] : memref<1x128xf32, #tpu.memory_space<vmem>>, vector<1x128xf32>
    %64 = vector.broadcast %63 : vector<1x128xf32> to vector<16x128xf32>
    %65 = arith.addf %62, %64 : vector<16x128xf32>
    %66 = vector.extract_strided_slice %65 {offsets = [0, 0], sizes = [16, 4], strides = [1, 1]} : vector<16x128xf32> to vector<16x4xf32>
    %cst_32 = arith.constant 0.000000e+00 : f32
    %67 = vector.broadcast %cst_32 : f32 to vector<16x4xf32>
    %68 = arith.subf %67, %66 : vector<16x4xf32>
    %69 = math.exp %68 : vector<16x4xf32>
    %cst_33 = arith.constant 1.000000e+00 : f32
    %70 = vector.broadcast %cst_33 : f32 to vector<16x4xf32>
    %71 = arith.addf %70, %69 : vector<16x4xf32>
    %72 = tpu.reciprocal %71 {approx = true} : vector<16x4xf32> -> vector<16x4xf32>
    %c0_34 = arith.constant 0 : index
    %c0_35 = arith.constant 0 : index
    %73 = vector.load %arg10[%c0_34, %c0_35] : memref<16x4xf32, #tpu.memory_space<vmem>>, vector<16x4xf32>
    tpu.vector_store %arg10[%c0_34, %c0_35], %72 {strides = array<i32>} : memref<16x4xf32, #tpu.memory_space<vmem>>, vector<16x4xf32>,
    return
  }
  func.func @transform_0(%arg0: i32) -> (i32, i32) {
    %c0_i32 = arith.constant 0 : i32
    %c0_i32_0 = arith.constant 0 : i32
    return %arg0, %c0_i32 : i32, i32
  }
  func.func @transform_1(%arg0: i32) -> (i32, i32) {
    %c0_i32 = arith.constant 0 : i32
    %c0_i32_0 = arith.constant 0 : i32
    %c0_i32_1 = arith.constant 0 : i32
    return %c0_i32, %c0_i32_0 : i32, i32
  }
  func.func @transform_2(%arg0: i32) -> (i32, i32) {
    %c0_i32 = arith.constant 0 : i32
    %c0_i32_0 = arith.constant 0 : i32
    %c0_i32_1 = arith.constant 0 : i32
    return %c0_i32, %c0_i32_0 : i32, i32
  }
  func.func @transform_3(%arg0: i32) -> (i32, i32) {
    %c0_i32 = arith.constant 0 : i32
    %c0_i32_0 = arith.constant 0 : i32
    %c0_i32_1 = arith.constant 0 : i32
    return %c0_i32, %c0_i32_0 : i32, i32
  }
  func.func @transform_4(%arg0: i32) -> (i32, i32) {
    %c0_i32 = arith.constant 0 : i32
    %c0_i32_0 = arith.constant 0 : i32
    %c0_i32_1 = arith.constant 0 : i32
    return %c0_i32, %c0_i32_0 : i32, i32
  }
  func.func @transform_5(%arg0: i32) -> (i32, i32) {
    %c0_i32 = arith.constant 0 : i32
    %c0_i32_0 = arith.constant 0 : i32
    %c0_i32_1 = arith.constant 0 : i32
    return %c0_i32, %c0_i32_0 : i32, i32
  }
  func.func @transform_6(%arg0: i32) -> (i32, i32) {
    %c0_i32 = arith.constant 0 : i32
    %c0_i32_0 = arith.constant 0 : i32
    %c0_i32_1 = arith.constant 0 : i32
    return %c0_i32, %c0_i32_0 : i32, i32
  }
  func.func @transform_7(%arg0: i32) -> (i32, i32) {
    %c0_i32 = arith.constant 0 : i32
    %c0_i32_0 = arith.constant 0 : i32
    %c0_i32_1 = arith.constant 0 : i32
    return %c0_i32, %c0_i32_0 : i32, i32
  }
  func.func @transform_8(%arg0: i32) -> (i32, i32) {
    %c0_i32 = arith.constant 0 : i32
    %c0_i32_0 = arith.constant 0 : i32
    %c0_i32_1 = arith.constant 0 : i32
    return %c0_i32, %c0_i32_0 : i32, i32
  }
  func.func @transform_9(%arg0: i32) -> (i32, i32) {
    %c0_i32 = arith.constant 0 : i32
    %c0_i32_0 = arith.constant 0 : i32
    return %arg0, %c0_i32 : i32, i32
  }
}

</mosaic_0001>

<bundles_post_ra>
// kernel: tpu_custom_call.1
= control target key start
LH: loop header
LB: loop body
LE: loop exit
PB: predicated region body
PF: predicated region fallthrough
CT: control target
= control target key end

     0   :  { %14 = vsyncpa [#allocation3], 0  ;;  %s574_s0 = inlined_call_operand.hbm [shape: f32[16,32], index: 0, kind: input, shape index: {}]   ;;  %s575_s1 = inlined_call_operand.hbm [shape: f32[32,32], index: 1, kind: input, shape index: {}]   ;;  %s576_s2 = inlined_call_operand.vmem [shape: f32[1,32], index: 2, kind: input, shape index: {}]   ;;  %s577_s3 = inlined_call_operand.hbm [shape: f32[32,32], index: 3, kind: input, shape index: {}]   ;;  %s578_s4 = inlined_call_operand.vmem [shape: f32[1,32], index: 4, kind: input, shape index: {}]   ;;  %s579_s5 = inlined_call_operand.hbm [shape: f32[32,128], index: 5, kind: input, shape index: {}]   ;;  %s580_s6 = inlined_call_operand.vmem [shape: f32[1,128], index: 6, kind: input, shape index: {}]   ;;  %s581_s7 = inlined_call_operand.vmem [shape: f32[1,32], index: 7, kind: input, shape index: {}]   ;;  %s582_s8 = inlined_call_operand.vmem [shape: f32[1,32], index: 8, kind: input, shape index: {}]   ;;  %s583_s9 = inlined_call_operand.vmem [shape: f32[16,4], index: 9, kind: output, shape index: {}]  }
   0x1   :  { %15 = vsyncpa [#allocation5], 0 }
   0x2   :  { %16 = vsyncpa [#allocation8], 0  ;;  %s34_s11 = sshll.u32 %s575_s1, 4  ;;  %s474_s12 = smov [#allocation4]   ;;  %s35_s11 = int_to_ptr.hbm [resolvable:$true] %s34_s11 }
   0x3   :  { %s36_s13 = sshll.u32 %s474_s12, 4  ;;  %s21_s16 = sshll.u32 %s574_s0, 4  ;;  %s37_s13 = int_to_ptr.vmem [resolvable:$true] %s36_s13  ;;  %s22_s16 = int_to_ptr.hbm [resolvable:$true] %s21_s16 }
   0x4   :  { %s475_s17 = smov 128   ;;  %s476_s18 = smov 8  }
   0x5   :  { %42 = dma.hbm_to_vmem [thread:$0]  %s35_s11, 512, %s37_s13, [#allocation5], %s475_s17, %s475_s17, %s476_s18  }
   0x6   :  { %s477_s19 = smov [#allocation2]   ;;  %s49_s23 = sshll.u32 %s577_s3, 4  ;;  %s50_s23 = int_to_ptr.hbm [resolvable:$true] %s49_s23 }
   0x7   :  { %s23_s20 = sshll.u32 %s477_s19, 4  ;;  %s64_s25 = sshll.u32 %s579_s5, 4  ;;  %s24_s20 = int_to_ptr.vmem [resolvable:$true] %s23_s20  ;;  %s65_s25 = int_to_ptr.hbm [resolvable:$true] %s64_s25 }
   0x8   :  { %29 = dma.hbm_to_vmem [thread:$0]  %s22_s16, 256, %s24_s20, [#allocation3], %s475_s17, %s475_s17, %s476_s18  }
   0x9   :  { %s478_s26 = smov [#allocation6]   ;;  %s479_s0 = smov [#allocation7]  }
   0xa   :  { %s51_s27 = sshll.u32 %s478_s26, 4  ;;  %s66_s28 = sshll.u32 %s479_s0, 4  ;;  %s52_s27 = int_to_ptr.vmem [resolvable:$true] %s51_s27  ;;  %s67_s28 = int_to_ptr.vmem [resolvable:$true] %s66_s28 }
   0xb   :  { %57 = dma.hbm_to_vmem [thread:$0]  %s50_s23, 512, %s52_s27, [#allocation5], %s475_s17, %s475_s17, %s476_s18  }
   0xc   :  { %72 = dma.hbm_to_vmem [thread:$0]  %s65_s25, 512, %s67_s28, [#allocation8], %s475_s17, %s475_s17, %s476_s18  }
   0xd   :  { %468 = dma.done.wait [#allocation3], 256  }
   0xe   :  { %469 = vsyncadd [#allocation3], 4294967040 }
   0xf   :  { %470 = dma.done.wait [#allocation5], 1024  }
  0x10   :  { %471 = vsyncadd [#allocation5], 4294966272 }
  0x11   :  { %472 = dma.done.wait [#allocation8], 512  }
  0x12   :  { %473 = vsyncadd [#allocation8], 4294966784  ;;  %v100_v0 = vld [vmem:[#allocation4 + $0x18] sm:$0xff]  ;;  %v99_v1 = vld [vmem:[#allocation4 + $0x10] sm:$0xff]  ;;  %vm105_vm0 = vcmask 261120   ;;  %v480_v58 = vmov 32.0  }
  0x13   :  { %124 = vmatpush.msra.mxu0 %v100_v0  ;;  %334 = vmatpush.msra.mxu3 %v100_v0  ;;  %v98_v2 = vld [vmem:[#allocation4 + $0x8] sm:$0xff]  ;;  %v97_v3 = vld [vmem:[#allocation4] sm:$0xff]  ;;  %v95_v4 = vld [vmem:[#allocation2] sm:$0xff]  ;;  %vm318_vm8 = vcmask 31744  }
  0x14   :  { %v96_v5 = vld [vmem:[#allocation2 + $0x8] sm:$0xff]  ;;  %v155_v7 = vld [vmem:[#allocation6 + $0x10] sm:$0xff]  ;;  %v154_v8 = vld [vmem:[#allocation6 + $0x8] sm:$0xff] }
  0x15   :  { %125 = vmatpush.msra.mxu0 %v99_v1  ;;  %335 = vmatpush.msra.mxu3 %v99_v1  ;;  %v156_v6 = vld [vmem:[#allocation6 + $0x18] sm:$0xff]  ;;  %v153_v9 = vld [vmem:[#allocation6] sm:$0xff]  ;;  %v345_v10 = vld [vmem:[%s576_s2] ss:$0 sm:$0xff] }
  0x16   :  { %179 = vmatpush.msra.mxu1 %v156_v6  ;;  %v346_v33 = vld [vmem:[%s578_s4] ss:$0 sm:$0xff] }
  0x17   :  { %126 = vmatpush.msra.mxu0 %v98_v2  ;;  %336 = vmatpush.msra.mxu3 %v98_v2 }
  0x18   :  { %180 = vmatpush.msra.mxu1 %v155_v7 }
  0x19   :  { %127 = vmatpush.msra.mxu0 %v97_v3  ;;  %337 = vmatpush.msra.mxu3 %v97_v3 }
  0x1a   :  { %328 = vmatmul.msk.f32.vlgmr.msra.gmra.mxu0 %vm105_vm0, %v95_v4  ;;  %329 = vmatmul.msk.f32.vlgmr.msra.gmra.mxu3 %vm105_vm0, %v96_v5 }
  0x1b   :  { %181 = vmatpush.msra.mxu1 %v154_v8 }
  0x1d   :  { %182 = vmatpush.msra.mxu1 %v153_v9 }
  0x97   :  { %v129_v11 = vpop.f32.mrf.mxu0 }
  0x98   :  { %v130_v12 = vadd.f32 %v345_v10, %v129_v11  ;;  %v274_v11 = vld [vmem:[#allocation7 + $0x18] sm:$0xff] }
  0x99   :  { %297 = vmatpush.msra.mxu2 %v274_v11 }
  0x9a   :  { %v137_v13 = vmul.f32 0.044715, %v130_v12  ;;  %v135_v26 = vmul.f32 0.5, %v130_v12 }
  0x9c   :  { %v139_v14 = vmul.f32 %v137_v13, %v130_v12  ;;  %v272_v13 = vld [vmem:[#allocation7 + $0x8] sm:$0xff] }
  0x9d   :  { %v132_v15 = vpop.f32.mrf.mxu3 }
  0x9e   :  { %v133_v16 = vadd.f32 %v345_v10, %v132_v15  ;;  %v141_v17 = vmul.f32 %v139_v14, %v130_v12  ;;  %v271_v14 = vld [vmem:[#allocation7] sm:$0xff] }
  0xa0   :  { %v138_v18 = vmul.f32 0.044715, %v133_v16  ;;  %v143_v19 = vadd.f32 %v141_v17, %v130_v12  ;;  %v136_v31 = vmul.f32 0.5, %v133_v16  ;;  %v273_v12 = vld [vmem:[#allocation7 + $0x10] sm:$0xff] }
  0xa1   :  { %298 = vmatpush.msra.mxu2 %v273_v12 }
  0xa2   :  { %v145_v20 = vmul.f32 0.7978846, %v143_v19  ;;  %v140_v21 = vmul.f32 %v138_v18, %v133_v16 }
  0xa3   :  { %299 = vmatpush.msra.mxu2 %v272_v13 }
  0xa4   :  { %350 = vtanh.f32 %v145_v20  ;;  %v142_v22 = vmul.f32 %v140_v21, %v133_v16 }
  0xa5   :  { %300 = vmatpush.msra.mxu2 %v271_v14 }
  0xa6   :  { %v144_v23 = vadd.f32 %v142_v22, %v133_v16 }
  0xa8   :  { %v146_v24 = vmul.f32 0.7978846, %v144_v23 }
  0xaa   :  { %v351_v25 = vpop.eup %350  ;;  %352 = vtanh.f32 %v146_v24 }
  0xab   :  { %v149_v27 = vadd.f32 1.0, %v351_v25 }
  0xad   :  { %v151_v28 = vmul.f32 %v149_v27, %v135_v26 }
  0xaf   :  { %330 = vmatmul.msk.f32.vlgmr.msra.gmra.mxu1 %vm105_vm0, %v151_v28 }
  0xb0   :  { %v353_v29 = vpop.eup %352 }
  0xb1   :  { %v150_v30 = vadd.f32 1.0, %v353_v29  ;;  %v347_v29 = vld [vmem:[%s581_s7] ss:$0 sm:$0xff] }
  0xb3   :  { %v152_v32 = vmul.f32 %v150_v30, %v136_v31 }
  0xb7   :  { %331 = vmatmul.msk.f32.gmra.mxu1 %vm105_vm0, %v152_v32 }
 0x12c   :  { %v184_v34 = vpop.f32.mrf.mxu1 }
 0x12d   :  { %v185_v35 = vadd.f32 %v346_v33, %v184_v34 }
 0x12f   :  { %v192_v36 = vmul.f32 0.044715, %v185_v35  ;;  %v190_v49 = vmul.f32 0.5, %v185_v35 }
 0x131   :  { %v194_v37 = vmul.f32 %v192_v36, %v185_v35 }
 0x133   :  { %v196_v38 = vmul.f32 %v194_v37, %v185_v35 }
 0x134   :  { %v187_v39 = vpop.f32.mrf.mxu1 }
 0x135   :  { %v188_v40 = vadd.f32 %v346_v33, %v187_v39  ;;  %v198_v41 = vadd.f32 %v196_v38, %v185_v35  ;;  %v348_v33 = vld [vmem:[%s582_s8] ss:$0 sm:$0xff] }
 0x137   :  { %v193_v42 = vmul.f32 0.044715, %v188_v40  ;;  %v200_v43 = vmul.f32 0.7978846, %v198_v41  ;;  %v191_v54 = vmul.f32 0.5, %v188_v40 }
 0x139   :  { %354 = vtanh.f32 %v200_v43  ;;  %v195_v44 = vmul.f32 %v193_v42, %v188_v40  ;;  %v349_v43 = vld [vmem:[%s580_s6] ss:$0 sm:$0xff] }
 0x13b   :  { %v197_v45 = vmul.f32 %v195_v44, %v188_v40 }
 0x13d   :  { %v199_v46 = vadd.f32 %v197_v45, %v188_v40 }
 0x13f   :  { %v355_v47 = vpop.eup %354  ;;  %v201_v48 = vmul.f32 0.7978846, %v199_v46 }
 0x140   :  { %v204_v50 = vadd.f32 1.0, %v355_v47 }
 0x141   :  { %356 = vtanh.f32 %v201_v48 }
 0x142   :  { %v206_v51 = vmul.f32 %v204_v50, %v190_v49  ;;  %358 = vrcp.f32 %v480_v58 }
 0x144   :  { %v208_v52 = vsel %vm105_vm0, %v206_v51, 0.0 }
 0x145   :  { %209 = vadd.xlane.f32.xlu0 %v208_v52 }
 0x147   :  { %v357_v53 = vpop.eup %356 }
 0x148   :  { %v205_v55 = vadd.f32 1.0, %v357_v53  ;;  %v359_v59 = vpop.eup %358 }
 0x149   :  { %v215_v60 = vmul.f32 32.0, %v359_v59  ;;  %vm219_vm1 = vweird.f32 %v359_v59 }
 0x14a   :  { %v207_v56 = vmul.f32 %v205_v55, %v191_v54 }
 0x14b   :  { %v216_v61 = vsub.f32 1.0, %v215_v60 }
 0x14c   :  { %v211_v57 = vsel %vm105_vm0, %v207_v56, 0.0 }
 0x14d   :  { %212 = vadd.xlane.f32.xlu0 %v211_v57  ;;  %v217_v62 = vmul.f32 %v359_v59, %v216_v61 }
 0x14f   :  { %v218_v63 = vadd.f32 %v359_v59, %v217_v62 }
 0x151   :  { %v220_v0 = vsel %vm219_vm1, %v359_v59, %v218_v63 }
 0x1b8   :  { %v210_v1 = vpop.xlane.xlu0 %209 }
 0x1b9   :  { %v221_v2 = vmul.f32 %v220_v0, %v210_v1 }
 0x1bb   :  { %v223_v3 = vsub.f32 %v206_v51, %v221_v2 }
 0x1bd   :  { %v225_v4 = vmul.f32 %v223_v3, %v223_v3 }
 0x1bf   :  { %v227_v5 = vsel %vm105_vm0, %v225_v4, 0.0 }
 0x1c0   :  { %228 = vadd.xlane.f32.xlu1 %v227_v5  ;;  %v213_v6 = vpop.xlane.xlu0 %212 }
 0x1c1   :  { %v222_v7 = vmul.f32 %v220_v0, %v213_v6 }
 0x1c3   :  { %v224_v8 = vsub.f32 %v207_v56, %v222_v7 }
 0x1c5   :  { %v226_v9 = vmul.f32 %v224_v8, %v224_v8 }
 0x1c7   :  { %v230_v10 = vsel %vm105_vm0, %v226_v9, 0.0 }
 0x1c8   :  { %231 = vadd.xlane.f32.xlu1 %v230_v10 }
 0x233   :  { %v229_v15 = vpop.xlane.xlu1 %228 }
 0x234   :  { %v233_v16 = vmul.f32 %v229_v15, %v220_v0 }
 0x236   :  { %v235_v17 = vadd.f32 1e-05, %v233_v16 }
 0x238   :  { %360 = vrsqrt.f32 %v235_v17  ;;  %vm243_vm3 = vweird.f32 %v235_v17 }
 0x23b   :  { %v232_v18 = vpop.xlane.xlu1 %231 }
 0x23c   :  { %v234_v19 = vmul.f32 %v232_v18, %v220_v0 }
 0x23e   :  { %v361_v20 = vpop.eup %360  ;;  %v236_v21 = vadd.f32 1e-05, %v234_v19 }
 0x23f   :  { %v238_v22 = vmul.f32 %v361_v20, %v235_v17  ;;  %vm244_vm2 = vweird.f32 %v361_v20 }
 0x240   :  { %362 = vrsqrt.f32 %v236_v21  ;;  %vm245_vm4 = vmor %vm243_vm3, %vm244_vm2  ;;  %vm253_vm6 = vweird.f32 %v236_v21 }
 0x241   :  { %v239_v23 = vmul.f32 %v361_v20, %v238_v22 }
 0x243   :  { %v240_v24 = vmul.f32 0.5, %v239_v23 }
 0x245   :  { %v241_v25 = vsub.f32 1.5, %v240_v24 }
 0x246   :  { %v363_v26 = vpop.eup %362 }
 0x247   :  { %v242_v27 = vmul.f32 %v361_v20, %v241_v25  ;;  %v248_v28 = vmul.f32 %v363_v26, %v236_v21  ;;  %vm254_vm5 = vweird.f32 %v363_v26 }
 0x248   :  { %vm255_vm7 = vmor %vm253_vm6, %vm254_vm5 }
 0x249   :  { %v246_v30 = vsel %vm245_vm4, %v361_v20, %v242_v27  ;;  %v249_v31 = vmul.f32 %v363_v26, %v248_v28 }
 0x24a   :  { %v257_v32 = vmul.f32 %v246_v30, %v223_v3 }
 0x24b   :  { %v250_v34 = vmul.f32 0.5, %v249_v31 }
 0x24c   :  { %v263_v35 = vmul.f32 %v347_v29, %v257_v32 }
 0x24d   :  { %v251_v36 = vsub.f32 1.5, %v250_v34 }
 0x24e   :  { %v269_v37 = vadd.f32 %v348_v33, %v263_v35 }
 0x24f   :  { %v252_v38 = vmul.f32 %v363_v26, %v251_v36 }
 0x250   :  { %332 = vmatmul.msk.f32.vlgmr.msra.gmra.mxu2 %vm105_vm0, %v269_v37 }
 0x251   :  { %v256_v39 = vsel %vm255_vm7, %v363_v26, %v252_v38 }
 0x252   :  { %v258_v40 = vmul.f32 %v256_v39, %v224_v8 }
 0x254   :  { %v264_v41 = vmul.f32 %v347_v29, %v258_v40 }
 0x256   :  { %v270_v42 = vadd.f32 %v348_v33, %v264_v41 }
 0x258   :  { %333 = vmatmul.msk.f32.gmra.mxu2 %vm105_vm0, %v270_v42 }
 0x2d3   :  { %v302_v44 = vpop.f32.mrf.mxu2 }
 0x2d4   :  { %v303_v45 = vadd.f32 %v349_v43, %v302_v44 }
 0x2d6   :  { %v308_v46 = vsub.f32 0.0, %v303_v45 }
 0x2d8   :  { %v310_v47 = vmul.f32 1.442695, %v308_v46 }
 0x2da   :  { %364 = vpow2.f32 %v310_v47 }
 0x2db   :  { %v305_v48 = vpop.f32.mrf.mxu2 }
 0x2dc   :  { %v306_v49 = vadd.f32 %v349_v43, %v305_v48 }
 0x2de   :  { %v309_v50 = vsub.f32 0.0, %v306_v49 }
 0x2e0   :  { %v365_v51 = vpop.eup %364  ;;  %v312_v52 = vmul.f32 1.442695, %v309_v50 }
 0x2e1   :  { %v314_v53 = vadd.f32 1.0, %v365_v51 }
 0x2e2   :  { %366 = vpow2.f32 %v312_v52 }
 0x2e3   :  { %368 = vrcp.f32 %v314_v53 }
 0x2e8   :  { %v367_v54 = vpop.eup %366 }
 0x2e9   :  { %v369_v55 = vpop.eup %368  ;;  %v315_v56 = vadd.f32 1.0, %v367_v54 }
 0x2ea   :  { %319 = vst.msk [vmem:[%s583_s9] sm:$0xff] %vm318_vm8, %v369_v55 }
 0x2eb   :  { %370 = vrcp.f32 %v315_v56 }
 0x2f1   :  { %v371_v57 = vpop.eup %370 }
 0x2f2   :  { %320 = vst.msk [vmem:[%s583_s9 + $0x8] sm:$0xff] %vm318_vm8, %v371_v57 }
 0x2f3   :  { %325 = vsyncpa [#allocation3], 1 }
 0x2f4   :  { %326 = vsyncpa [#allocation5], 1 }
 0x2f5   :  { %327 = vsyncpa [#allocation8], 1 }

</bundles_post_ra>
